<compile_context>
chip_gen: v7x
topology: tpu7x:2x2x1
jax: 0.10.0
libtpu: 0.0.40
codegen_flags: <defaults>
</compile_context>

<pallas_src>
import functools

import jax
import jax.numpy as jnp
from jax.experimental import pallas as pl
from jax.experimental.pallas import tpu as pltpu


# ---------------------------------------------------------------------------
# Pallas kernel
# ---------------------------------------------------------------------------
def _diag_linear_kernel(x_ref, d_ref, b_ref, o_ref):
    # out = bias + input * diag   (torch.addcmul with value=1)
    # x_ref: (tm, H); d_ref / b_ref: (1, H) broadcast over the sublane axis.
    o_ref[...] = x_ref[...] * d_ref[...] + b_ref[...]


@functools.partial(jax.jit, static_argnames=("tm",))
def _diag_linear_flat(x2, diag2, bias2, *, tm):
    M, H = x2.shape
    grid = (M // tm,)
    row_spec = pl.BlockSpec((tm, H), lambda i: (i, 0))
    vec_spec = pl.BlockSpec((1, H), lambda i: (0, 0))   # resident params
    return pl.pallas_call(
        _diag_linear_kernel,
        out_shape=jax.ShapeDtypeStruct((M, H), x2.dtype),
        grid=grid,
        in_specs=[row_spec, vec_spec, vec_spec],
        out_specs=row_spec,
        compiler_params=pltpu.CompilerParams(
            dimension_semantics=("parallel",),
        ),
    )(x2, diag2, bias2)


def _pick_tm(M):
    """Largest sensible row tile: collapse the grid for small M, otherwise the
    biggest 8-aligned power-of-two-ish divisor (amortizes per-step overhead)."""
    if M <= 4096 or M % 8 != 0:
        return M
    for cand in (4096, 2048, 1024, 512, 256, 128, 64, 32, 16, 8):
        if M % cand == 0:
            return cand
    return M


def diagonal_linear_pallas(x, diag, bias, *, tm=None):
    """out = bias + x * diag, broadcasting diag/bias over all leading dims of x.

    x    : (..., H) f32
    diag : (H,) f32
    bias : (H,) f32
    """
    orig_shape = x.shape
    H = orig_shape[-1]
    M = 1
    for d in orig_shape[:-1]:
        M *= d
    M = max(M, 1)

    x2 = x.reshape(M, H)
    diag2 = diag.reshape(1, H)
    bias2 = bias.reshape(1, H)

    if tm is None:
        tm = _pick_tm(M)
    assert M % tm == 0, "flattened leading dims must be a multiple of the row tile"

    out2 = _diag_linear_flat(x2, diag2, bias2, tm=tm)
    return out2.reshape(orig_shape)


# ---------------------------------------------------------------------------
# Pure-JAX reference (mirrors the PyTorch forward)
# ---------------------------------------------------------------------------
def reference_forward(x, diag, bias):
    return bias + x * diag


if __name__ == "__main__":
    seq, batch, hidden = 8, 2, 32

    key = jax.random.PRNGKey(0)
    k_d, k_b, k_x = jax.random.split(key, 3)

    # nn.Parameter(torch.randn(hidden_size)) equivalents.
    diag = jax.random.normal(k_d, (hidden,), jnp.float32)
    bias = jax.random.normal(k_b, (hidden,), jnp.float32)
    x = jax.random.normal(k_x, (seq, batch, hidden), jnp.float32)

    out = diagonal_linear_pallas(x, diag, bias)
    out = jax.block_until_ready(out)

    ref = reference_forward(x, diag, bias)
    assert out.shape == ref.shape
    assert jnp.allclose(out, ref, atol=1e-6, rtol=1e-6)

    # Also exercise a 2-D input path (M not equal to seq*batch of the 3-D case).
    x2d = jax.random.normal(jax.random.fold_in(k_x, 1), (16, hidden), jnp.float32)
    out2d = jax.block_until_ready(diagonal_linear_pallas(x2d, diag, bias))
    assert jnp.allclose(out2d, reference_forward(x2d, diag, bias), atol=1e-6, rtol=1e-6)

    print("KERNEL_OK")
</pallas_src>

<mosaic_0001>
module attributes {stable_mosaic.version = 11 : i64} {
  func.func @_diag_linear_kernel(%arg0: i32, %arg1: memref<16x32xf32, #tpu.memory_space<vmem>>, %arg2: memref<1x32xf32, #tpu.memory_space<vmem>>, %arg3: memref<1x32xf32, #tpu.memory_space<vmem>>, %arg4: memref<16x32xf32, #tpu.memory_space<vmem>>) attributes {dimension_semantics = [#tpu.dimension_semantics<parallel>], iteration_bounds = array<i64: 1>, scalar_prefetch = 0 : i64, scratch_operands = 0 : i64, tpu.core_type = #tpu.core_type<tc>, window_params = [{transform_indices = @transform_0, window_bounds = array<i64: 16, 32>}, {pipeline_mode = #tpu.pipeline_mode<synchronous>, transform_indices = @transform_1, window_bounds = array<i64: 1, 32>}, {pipeline_mode = #tpu.pipeline_mode<synchronous>, transform_indices = @transform_2, window_bounds = array<i64: 1, 32>}, {transform_indices = @transform_3, window_bounds = array<i64: 16, 32>}]} {
    %c0 = arith.constant 0 : index
    %c0_0 = arith.constant 0 : index
    %0 = vector.load %arg1[%c0, %c0_0] : memref<16x32xf32, #tpu.memory_space<vmem>>, vector<16x32xf32>
    %c0_1 = arith.constant 0 : index
    %c0_2 = arith.constant 0 : index
    %1 = vector.load %arg2[%c0_1, %c0_2] : memref<1x32xf32, #tpu.memory_space<vmem>>, vector<1x32xf32>
    %2 = vector.broadcast %1 : vector<1x32xf32> to vector<16x32xf32>
    %3 = arith.mulf %0, %2 : vector<16x32xf32>
    %c0_3 = arith.constant 0 : index
    %c0_4 = arith.constant 0 : index
    %4 = vector.load %arg3[%c0_3, %c0_4] : memref<1x32xf32, #tpu.memory_space<vmem>>, vector<1x32xf32>
    %5 = vector.broadcast %4 : vector<1x32xf32> to vector<16x32xf32>
    %6 = arith.addf %3, %5 : vector<16x32xf32>
    %c0_5 = arith.constant 0 : index
    %c0_6 = arith.constant 0 : index
    %7 = vector.load %arg4[%c0_5, %c0_6] : memref<16x32xf32, #tpu.memory_space<vmem>>, vector<16x32xf32>
    tpu.vector_store %arg4[%c0_5, %c0_6], %6 {strides = array<i32>} : memref<16x32xf32, #tpu.memory_space<vmem>>, vector<16x32xf32>,
    return
  }
  func.func @transform_0(%arg0: i32) -> (i32, i32) {
    %c0_i32 = arith.constant 0 : i32
    %c0_i32_0 = arith.constant 0 : i32
    return %arg0, %c0_i32 : i32, i32
  }
  func.func @transform_1(%arg0: i32) -> (i32, i32) {
    %c0_i32 = arith.constant 0 : i32
    %c0_i32_0 = arith.constant 0 : i32
    %c0_i32_1 = arith.constant 0 : i32
    return %c0_i32, %c0_i32_0 : i32, i32
  }
  func.func @transform_2(%arg0: i32) -> (i32, i32) {
    %c0_i32 = arith.constant 0 : i32
    %c0_i32_0 = arith.constant 0 : i32
    %c0_i32_1 = arith.constant 0 : i32
    return %c0_i32, %c0_i32_0 : i32, i32
  }
  func.func @transform_3(%arg0: i32) -> (i32, i32) {
    %c0_i32 = arith.constant 0 : i32
    %c0_i32_0 = arith.constant 0 : i32
    return %arg0, %c0_i32 : i32, i32
  }
}

</mosaic_0001>

<bundles_post_ra>
// kernel: _diag_linear_flat.1
= control target key start
LH: loop header
LB: loop body
LE: loop exit
PB: predicated region body
PF: predicated region fallthrough
CT: control target
= control target key end

     0   :  { %8 = vsyncpa [#allocation3], 0  ;;  %s183_s0 = inlined_call_operand.hbm [shape: f32[16,32], index: 0, kind: input, shape index: {}]   ;;  %s184_s1 = inlined_call_operand.vmem [shape: f32[1,32], index: 1, kind: input, shape index: {}]   ;;  %s185_s2 = inlined_call_operand.vmem [shape: f32[1,32], index: 2, kind: input, shape index: {}]   ;;  %s186_s3 = inlined_call_operand.hbm [shape: f32[16,32], index: 3, kind: output, shape index: {}]  }
   0x1   :  { %9 = vsyncpa [#allocation4], 0  ;;  %s123_s12 = smov [#allocation2]   ;;  %s75_s16 = scalar_lea.hbm %s183_s0, 256 }
   0x2   :  { %s15_s13 = sshll.u32 %s123_s12, 4  ;;  %p76_p0 = scmp.ne.s32.totalorder %s183_s0, %s75_s16  ;;  %s16_s13 = int_to_ptr.vmem [resolvable:$true] %s15_s13 }
   0x3   :  { %p79_p1 = scmp.lt.u32.totalorder %s75_s16, %s183_s0 }
   0x5   :  { %p81_p2 = pnand %p79_p1, %p76_p0 }
   0x7   :  { %84 = shalt.err (!%p81_p2)
}
   0x8   :  { %s85_s21 = scalar_lea.vmem %s16_s13, 256  ;;  %p90_p4 = scmp.lt.s32.totalorder %s16_s13, %s16_s13 }
   0x9   :  { %p86_p3 = scmp.ne.s32.totalorder %s16_s13, %s85_s21  ;;  %p91_p5 = scmp.lt.s32.totalorder %s85_s21, %s85_s21 }
   0xb   :  { %p92_p6 = por %p91_p5, %p90_p4 }
   0xd   :  { %p93_p7 = pnand %p92_p6, %p86_p3 }
   0xf   :  { %96 = shalt.err (!%p93_p7)
}
  0x10   :  { %s124_s22 = smov 128   ;;  %s125_s23 = smov 8  }
  0x11   :  { %21 = dma.hbm_to_vmem [thread:$0]  %s183_s0, 256, %s16_s13, [#allocation3], %s124_s22, %s124_s22, %s125_s23  }
  0x12   :  { %119 = dma.done.wait [#allocation3], 256  }
  0x13   :  { %120 = vsyncadd [#allocation3], 4294967040  ;;  %v29_v0 = vld [vmem:[#allocation2] sm:$0xff]  ;;  %v30_v4 = vld [vmem:[#allocation2 + $0x8] sm:$0xff]  ;;  %s126_s30 = smov [#allocation5]   ;;  %vm49_vm0 = vcmask 261120  }
  0x14   :  { %v69_v1 = vld [vmem:[%s184_s1] ss:$0 sm:$0xff]  ;;  %s57_s4 = sshll.u32 %s126_s30, 4  ;;  %s58_s4 = int_to_ptr.vmem [resolvable:$true] %s57_s4 }
  0x15   :  { %v70_v2 = vld [vmem:[%s185_s2] ss:$0 sm:$0xff]  ;;  %v38_v3 = vmul.f32 %v69_v1, %v29_v0  ;;  %v39_v5 = vmul.f32 %v69_v1, %v30_v4  ;;  %s97_s0 = scalar_lea.vmem %s58_s4, 256  ;;  %p102_p9 = scmp.lt.s32.totalorder %s58_s4, %s58_s4 }
  0x16   :  { %p98_p8 = scmp.ne.s32.totalorder %s58_s4, %s97_s0  ;;  %p103_p10 = scmp.lt.s32.totalorder %s97_s0, %s97_s0 }
  0x17   :  { %v47_v6 = vadd.f32 %v70_v2, %v38_v3  ;;  %v48_v7 = vadd.f32 %v70_v2, %v39_v5 }
  0x18   :  { %p104_p11 = por %p103_p10, %p102_p9 }
  0x19   :  { %50 = vst.msk [vmem:[#allocation5] sm:$0xff] %vm49_vm0, %v47_v6  ;;  %51 = vst.msk [vmem:[#allocation5 + $0x8] sm:$0xff] %vm49_vm0, %v48_v7 }
  0x1a   :  { %p105_p12 = pnand %p104_p11, %p98_p8 }
  0x1c   :  { %108 = shalt.err (!%p105_p12)
}
  0x1d   :  { %s109_s5 = scalar_lea.hbm %s186_s3, 256 }
  0x1e   :  { %p110_p13 = scmp.ne.s32.totalorder %s186_s3, %s109_s5  ;;  %p113_p0 = scmp.lt.u32.totalorder %s109_s5, %s186_s3 }
  0x20   :  { %p115_p1 = pnand %p113_p0, %p110_p13 }
  0x22   :  { %118 = shalt.err (!%p115_p1)
}
  0x23   :  { %63 = dma.vmem_to_hbm [thread:$0]  %s58_s4, 256, %s186_s3, [#allocation4], %s124_s22, %s124_s22, %s125_s23  }
  0x24   :  { %121 = dma.done.wait [#allocation4], 256  }
  0x25   :  { %122 = vsyncadd [#allocation4], 4294967040 }
  0x26   :  { %67 = vsyncpa [#allocation3], 1 }
  0x27   :  { %68 = vsyncpa [#allocation4], 1 }

</bundles_post_ra>
